<compile_context>
chip_gen: v7x
topology: tpu7x:2x2x1
jax: 0.10.0
libtpu: 0.0.40
codegen_flags: <defaults>
</compile_context>

<pallas_src>
import functools

import jax
import jax.numpy as jnp
from jax.experimental import pallas as pl
from jax.experimental.pallas import tpu as pltpu

IN_DIM = 64
HID_DIM = 32
OUT_DIM = 10


def simplenet_kernel(x_ref, w1_ref, b1_ref, w2_ref, b2_ref, o_ref):
    # fc1: [tb, 64] @ [64, 32] on the MXU (bf16 operands, f32 accumulate).
    x = x_ref[...].astype(jnp.bfloat16)  # in-kernel cast: free VPU work under the DMA
    h = jnp.dot(x, w1_ref[...].astype(jnp.bfloat16),
                preferred_element_type=jnp.float32)
    h = jnp.maximum(h + b1_ref[...], 0.0)  # bias + ReLU in f32 (VPU)
    # dropout(0.5): eval-mode identity.
    # TODO(synk): training-mode dropout would need pltpu.prng_seed/prng_random_bits
    #             plus a 1/(1-p) rescale of the kept activations.
    # fc2: [tb, 32] @ [32, 10] -> f32.  The output array really is 10 wide, so the
    # reductions below mask the unused vreg lanes automatically (no manual -1e30 mask).
    logits = jnp.dot(h.astype(jnp.bfloat16), w2_ref[...].astype(jnp.bfloat16),
                     preferred_element_type=jnp.float32)
    logits = logits + b2_ref[...]
    # log_softmax over dim=1, all in f32.
    m = jnp.max(logits, axis=-1, keepdims=True)
    shifted = logits - m
    lse = jnp.log(jnp.sum(jnp.exp(shifted), axis=-1, keepdims=True))
    o_ref[...] = (shifted - lse).astype(o_ref.dtype)


@functools.partial(jax.jit, static_argnames=("tb",))
def _simplenet_pallas(x, w1, b1, w2, b2, tb):
    B = x.shape[0]
    grid = (pl.cdiv(B, tb),)
    flops = 2 * B * (IN_DIM * HID_DIM + HID_DIM * OUT_DIM)
    bytes_accessed = (
        B * IN_DIM * x.dtype.itemsize                      # x read (incoming dtype)
        + B * OUT_DIM * 4                                  # output write (f32, 10 lanes)
        + (IN_DIM * HID_DIM + HID_DIM * OUT_DIM) * 4       # weights (f32, resident)
        + (HID_DIM + OUT_DIM) * 4                          # biases (f32)
    )
    return pl.pallas_call(
        simplenet_kernel,
        out_shape=jax.ShapeDtypeStruct((B, OUT_DIM), jnp.float32),
        grid_spec=pltpu.PrefetchScalarGridSpec(
            num_scalar_prefetch=0,
            grid=grid,
            in_specs=[
                pl.BlockSpec((tb, IN_DIM), lambda i: (i, 0)),        # x tile
                pl.BlockSpec((IN_DIM, HID_DIM), lambda i: (0, 0)),   # w1 (resident)
                pl.BlockSpec((1, HID_DIM), lambda i: (0, 0)),        # b1
                pl.BlockSpec((HID_DIM, OUT_DIM), lambda i: (0, 0)),  # w2 (resident)
                pl.BlockSpec((1, OUT_DIM), lambda i: (0, 0)),        # b2
            ],
            out_specs=pl.BlockSpec((tb, OUT_DIM), lambda i: (i, 0)),
        ),
        compiler_params=pltpu.CompilerParams(
            dimension_semantics=("parallel",),
        ),
        cost_estimate=pl.CostEstimate(
            flops=flops,
            transcendentals=B * (OUT_DIM + 1),  # exp per logit + log per row
            bytes_accessed=bytes_accessed,
        ),
    )(x, w1, b1, w2, b2)


def _pick_tb(b8):
    """Batch tile (rows, multiple of 8) for a batch already rounded up to 8.

    Small batches fit in one grid step (nothing worth pipelining at that size).
    Larger batches use a fixed 512/1024-row tile with a cdiv grid so there are
    >= 4 steps for steady-state double-buffering (and >= 2 steps per v7x core),
    while keeping the ~0.35us per-step overhead negligible.  The double-buffered
    working set (<~0.7 MiB at tb=1024) is far below scoped VMEM on all chips.
    """
    if b8 <= 512:
        return b8
    if b8 <= 8192:
        return 512
    return 1024


def simplenet_forward(x, w1, b1, w2, b2):
    """x: [B, 64] (any float dtype). Returns log-probs [B, 10] f32."""
    B = x.shape[0]
    b8 = ((B + 7) // 8) * 8
    # Row padding only (to a multiple of 8) and only when needed; dtype unchanged.
    xp = jnp.pad(x, ((0, b8 - B), (0, 0))) if b8 != B else x
    out = _simplenet_pallas(xp, w1, b1, w2, b2, tb=_pick_tb(b8))
    return out[:B] if b8 != B else out


def init_params(key):
    """PyTorch-style Linear init: U(-1/sqrt(fan_in), 1/sqrt(fan_in))."""
    k1, k2, k3, k4 = jax.random.split(key, 4)
    bound1 = 1.0 / jnp.sqrt(IN_DIM)
    bound2 = 1.0 / jnp.sqrt(HID_DIM)
    # stored as [in, out] (transposed vs torch's [out, in])
    w1 = jax.random.uniform(k1, (IN_DIM, HID_DIM), jnp.float32, -bound1, bound1)
    b1 = jax.random.uniform(k2, (1, HID_DIM), jnp.float32, -bound1, bound1)
    w2 = jax.random.uniform(k3, (HID_DIM, OUT_DIM), jnp.float32, -bound2, bound2)
    b2 = jax.random.uniform(k4, (1, OUT_DIM), jnp.float32, -bound2, bound2)
    return w1, b1, w2, b2


def reference_forward_bf16(x, w1, b1, w2, b2):
    """Same bf16-operand / f32-accumulate recipe as the kernel (eval-mode dropout)."""
    h = jnp.dot(x.astype(jnp.bfloat16), w1.astype(jnp.bfloat16),
                preferred_element_type=jnp.float32) + b1
    h = jnp.maximum(h, 0.0)
    logits = jnp.dot(h.astype(jnp.bfloat16), w2.astype(jnp.bfloat16),
                     preferred_element_type=jnp.float32) + b2
    return jax.nn.log_softmax(logits, axis=1)


def reference_forward_f32(x, w1, b1, w2, b2):
    """Full-precision reference (checks f32 parity loosely, since MXU operands are bf16)."""
    h = jnp.maximum(jnp.dot(x, w1, precision=jax.lax.Precision.HIGHEST) + b1, 0.0)
    logits = jnp.dot(h, w2, precision=jax.lax.Precision.HIGHEST) + b2
    return jax.nn.log_softmax(logits, axis=1)


if __name__ == "__main__":
    key = jax.random.PRNGKey(0)
    pkey, xkey1, xkey2 = jax.random.split(key, 3)
    w1, b1, w2, b2 = init_params(pkey)

    # Case 1: ragged small batch (30 -> padded to 32 rows, single grid step).
    x1 = jax.random.normal(xkey1, (30, IN_DIM), jnp.float32)
    out1 = jax.block_until_ready(simplenet_forward(x1, w1, b1, w2, b2))
    assert out1.shape == (30, OUT_DIM)
    assert bool(jnp.all(jnp.isfinite(out1))), "non-finite output (case 1)"
    assert jnp.allclose(out1, reference_forward_bf16(x1, w1, b1, w2, b2),
                        atol=1e-3, rtol=1e-3), "mismatch vs bf16 reference (case 1)"
    assert jnp.allclose(out1, reference_forward_f32(x1, w1, b1, w2, b2),
                        atol=2e-2, rtol=2e-2), "mismatch vs f32 reference (case 1)"

    # Case 2: exercises the cdiv grid with a partial last tile (600 rows, tb=512 -> 2 steps).
    x2 = jax.random.normal(xkey2, (600, IN_DIM), jnp.float32)
    out2 = jax.block_until_ready(simplenet_forward(x2, w1, b1, w2, b2))
    assert out2.shape == (600, OUT_DIM)
    assert bool(jnp.all(jnp.isfinite(out2))), "non-finite output (case 2)"
    assert jnp.allclose(out2, reference_forward_bf16(x2, w1, b1, w2, b2),
                        atol=1e-3, rtol=1e-3), "mismatch vs bf16 reference (case 2)"

    print("KERNEL_OK")
</pallas_src>

<mosaic_0001>
module attributes {stable_mosaic.version = 11 : i64} {
  func.func @simplenet_kernel(%arg0: i32, %arg1: memref<32x64xf32, #tpu.memory_space<vmem>>, %arg2: memref<64x32xf32, #tpu.memory_space<vmem>>, %arg3: memref<1x32xf32, #tpu.memory_space<vmem>>, %arg4: memref<32x10xf32, #tpu.memory_space<vmem>>, %arg5: memref<1x10xf32, #tpu.memory_space<vmem>>, %arg6: memref<32x10xf32, #tpu.memory_space<vmem>>) attributes {dimension_semantics = [#tpu.dimension_semantics<parallel>], iteration_bounds = array<i64: 1>, scalar_prefetch = 0 : i64, scratch_operands = 0 : i64, tpu.core_type = #tpu.core_type<tc>, window_params = [{transform_indices = @transform_0, window_bounds = array<i64: 32, 64>}, {pipeline_mode = #tpu.pipeline_mode<synchronous>, transform_indices = @transform_1, window_bounds = array<i64: 64, 32>}, {pipeline_mode = #tpu.pipeline_mode<synchronous>, transform_indices = @transform_2, window_bounds = array<i64: 1, 32>}, {pipeline_mode = #tpu.pipeline_mode<synchronous>, transform_indices = @transform_3, window_bounds = array<i64: 32, 10>}, {pipeline_mode = #tpu.pipeline_mode<synchronous>, transform_indices = @transform_4, window_bounds = array<i64: 1, 10>}, {transform_indices = @transform_5, window_bounds = array<i64: 32, 10>}]} {
    %c0 = arith.constant 0 : index
    %c0_0 = arith.constant 0 : index
    %0 = vector.load %arg1[%c0, %c0_0] : memref<32x64xf32, #tpu.memory_space<vmem>>, vector<32x64xf32>
    %1 = arith.truncf %0 : vector<32x64xf32> to vector<32x64xbf16>
    %c0_1 = arith.constant 0 : index
    %c0_2 = arith.constant 0 : index
    %2 = vector.load %arg2[%c0_1, %c0_2] : memref<64x32xf32, #tpu.memory_space<vmem>>, vector<64x32xf32>
    %3 = arith.truncf %2 : vector<64x32xf32> to vector<64x32xbf16>
    %cst = arith.constant dense<0.000000e+00> : vector<32x32xf32>
    %4 = tpu.matmul %1, %3, %cst {dimension_numbers = #tpu.dot_dimension_numbers<[1], [0], [0], [1], [0, 0, 1, 1], [], []>} : vector<32x64xbf16>, vector<64x32xbf16>, vector<32x32xf32> -> vector<32x32xf32>
    %c0_3 = arith.constant 0 : index
    %c0_4 = arith.constant 0 : index
    %5 = vector.load %arg3[%c0_3, %c0_4] : memref<1x32xf32, #tpu.memory_space<vmem>>, vector<1x32xf32>
    %6 = vector.broadcast %5 : vector<1x32xf32> to vector<32x32xf32>
    %7 = arith.addf %4, %6 : vector<32x32xf32>
    %cst_5 = arith.constant 0.000000e+00 : f32
    %8 = vector.broadcast %cst_5 : f32 to vector<32x32xf32>
    %9 = arith.maximumf %7, %8 : vector<32x32xf32>
    %10 = arith.truncf %9 : vector<32x32xf32> to vector<32x32xbf16>
    %c0_6 = arith.constant 0 : index
    %c0_7 = arith.constant 0 : index
    %11 = vector.load %arg4[%c0_6, %c0_7] : memref<32x10xf32, #tpu.memory_space<vmem>>, vector<32x10xf32>
    %12 = arith.truncf %11 : vector<32x10xf32> to vector<32x10xbf16>
    %cst_8 = arith.constant dense<0.000000e+00> : vector<32x10xf32>
    %13 = tpu.matmul %10, %12, %cst_8 {dimension_numbers = #tpu.dot_dimension_numbers<[1], [0], [0], [1], [0, 0, 1, 1], [], []>} : vector<32x32xbf16>, vector<32x10xbf16>, vector<32x10xf32> -> vector<32x10xf32>
    %c0_9 = arith.constant 0 : index
    %c0_10 = arith.constant 0 : index
    %14 = vector.load %arg5[%c0_9, %c0_10] : memref<1x10xf32, #tpu.memory_space<vmem>>, vector<1x10xf32>
    %15 = vector.broadcast %14 : vector<1x10xf32> to vector<32x10xf32>
    %16 = arith.addf %13, %15 : vector<32x10xf32>
    %cst_11 = arith.constant dense<0xFF800000> : vector<32xf32>
    %17 = vector.multi_reduction <maximumf>, %16, %cst_11 [1] : vector<32x10xf32> to vector<32xf32>
    %18 = vector.shape_cast %17 : vector<32xf32> to vector<32x1xf32>
    %19 = vector.broadcast %18 : vector<32x1xf32> to vector<32x10xf32>
    %20 = arith.subf %16, %19 : vector<32x10xf32>
    %21 = math.exp %20 : vector<32x10xf32>
    %cst_12 = arith.constant dense<0.000000e+00> : vector<32xf32>
    %22 = vector.multi_reduction <add>, %21, %cst_12 [1] : vector<32x10xf32> to vector<32xf32>
    %23 = vector.shape_cast %22 : vector<32xf32> to vector<32x1xf32>
    %24 = math.log %23 : vector<32x1xf32>
    %25 = vector.broadcast %24 : vector<32x1xf32> to vector<32x10xf32>
    %26 = arith.subf %20, %25 : vector<32x10xf32>
    %c0_13 = arith.constant 0 : index
    %c0_14 = arith.constant 0 : index
    %27 = vector.load %arg6[%c0_13, %c0_14] : memref<32x10xf32, #tpu.memory_space<vmem>>, vector<32x10xf32>
    tpu.vector_store %arg6[%c0_13, %c0_14], %26 {strides = array<i32>} : memref<32x10xf32, #tpu.memory_space<vmem>>, vector<32x10xf32>,
    return
  }
  func.func @transform_0(%arg0: i32) -> (i32, i32) {
    %c0_i32 = arith.constant 0 : i32
    %c0_i32_0 = arith.constant 0 : i32
    return %arg0, %c0_i32 : i32, i32
  }
  func.func @transform_1(%arg0: i32) -> (i32, i32) {
    %c0_i32 = arith.constant 0 : i32
    %c0_i32_0 = arith.constant 0 : i32
    %c0_i32_1 = arith.constant 0 : i32
    return %c0_i32, %c0_i32_0 : i32, i32
  }
  func.func @transform_2(%arg0: i32) -> (i32, i32) {
    %c0_i32 = arith.constant 0 : i32
    %c0_i32_0 = arith.constant 0 : i32
    %c0_i32_1 = arith.constant 0 : i32
    return %c0_i32, %c0_i32_0 : i32, i32
  }
  func.func @transform_3(%arg0: i32) -> (i32, i32) {
    %c0_i32 = arith.constant 0 : i32
    %c0_i32_0 = arith.constant 0 : i32
    %c0_i32_1 = arith.constant 0 : i32
    return %c0_i32, %c0_i32_0 : i32, i32
  }
  func.func @transform_4(%arg0: i32) -> (i32, i32) {
    %c0_i32 = arith.constant 0 : i32
    %c0_i32_0 = arith.constant 0 : i32
    %c0_i32_1 = arith.constant 0 : i32
    return %c0_i32, %c0_i32_0 : i32, i32
  }
  func.func @transform_5(%arg0: i32) -> (i32, i32) {
    %c0_i32 = arith.constant 0 : i32
    %c0_i32_0 = arith.constant 0 : i32
    return %arg0, %c0_i32 : i32, i32
  }
}

</mosaic_0001>

<bundles_post_ra>
// kernel: _simplenet_pallas.1
= control target key start
LH: loop header
LB: loop body
LE: loop exit
PB: predicated region body
PF: predicated region fallthrough
CT: control target
= control target key end

     0   :  { %vm46_vm0 = vcmask 523264   ;;  %vm121_vm1 = vcmask 261120   ;;  %vm177_vm2 = vcmask 80896   ;;  %s396_s1 = inlined_call_operand.vmem [shape: f32[64,32], index: 1, kind: input, shape index: {}]   ;;  %s397_s0 = inlined_call_operand.vmem [shape: f32[32,64], index: 0, kind: input, shape index: {}]   ;;  %s398_s3 = inlined_call_operand.vmem [shape: f32[32,10], index: 3, kind: input, shape index: {}]   ;;  %s399_s2 = inlined_call_operand.vmem [shape: f32[1,32], index: 2, kind: input, shape index: {}]   ;;  %s400_s4 = inlined_call_operand.vmem [shape: f32[1,10], index: 4, kind: input, shape index: {}]   ;;  %s401_s5 = inlined_call_operand.vmem [shape: f32[32,10], index: 5, kind: output, shape index: {}]  }
   0x1   :  { %v27_v0 = vld [vmem:[%s396_s1] sm:$0xff]  ;;  %v28_v1 = vld [vmem:[%s396_s1 + $0x8] sm:$0xff]  ;;  %v29_v2 = vld [vmem:[%s396_s1 + $0x10] sm:$0xff] }
   0x2   :  { %v35_v3 = vpack.c.bf16 %v28_v1, %v27_v0  ;;  %v30_v4 = vld [vmem:[%s396_s1 + $0x18] sm:$0xff]  ;;  %v31_v6 = vld [vmem:[%s396_s1 + $0x20] sm:$0xff]  ;;  %v32_v7 = vld [vmem:[%s396_s1 + $0x28] sm:$0xff] }
   0x3   :  { %v36_v5 = vpack.c.bf16 %v30_v4, %v29_v2  ;;  %v21_v8 = vld [vmem:[%s397_s0] sm:$0xff]  ;;  %v22_v9 = vld [vmem:[%s397_s0 + $0x8] sm:$0xff]  ;;  %v37_v11 = vpack.c.bf16 %v32_v7, %v31_v6  ;;  %v33_v12 = vld [vmem:[%s396_s1 + $0x30] sm:$0xff] }
   0x4   :  { %250 = vmatprep.subr.bf16.mxu0 %v35_v3  ;;  %v25_v10 = vpack.c.bf16 %v22_v9, %v21_v8  ;;  %v34_v13 = vld [vmem:[%s396_s1 + $0x38] sm:$0xff]  ;;  %v23_v15 = vld [vmem:[%s397_s0 + $0x10] sm:$0xff]  ;;  %v108_v18 = vld [vmem:[%s398_s3] sm:$0xff] }
   0x5   :  { %251 = vmatpush3.bf16.msra.mxu0 %v35_v3  ;;  %v38_v14 = vpack.c.bf16 %v34_v13, %v33_v12  ;;  %v24_v16 = vld [vmem:[%s397_s0 + $0x18] sm:$0xff]  ;;  %v109_v19 = vld [vmem:[%s398_s3 + $0x8] sm:$0xff]  ;;  %v110_v21 = vld [vmem:[%s398_s3 + $0x10] sm:$0xff] }
   0x6   :  { %252 = vmatprep.subr.bf16.mxu0 %v36_v5  ;;  %258 = vmatprep.mubr.msk.bf16.mxu0 %vm46_vm0, %v25_v10  ;;  %v26_v17 = vpack.c.bf16 %v24_v16, %v23_v15  ;;  %v112_v20 = vpack.c.bf16 %v109_v19, %v108_v18  ;;  %v111_v22 = vld [vmem:[%s398_s3 + $0x18] sm:$0xff]  ;;  %v234_v24 = vld [vmem:[%s399_s2] ss:$0 sm:$0xff] }
   0x7   :  { %v113_v23 = vpack.c.bf16 %v111_v22, %v110_v21  ;;  %v237_v39 = vld [vmem:[%s400_s4] ss:$0 sm:$0xff] }
   0x8   :  { %262 = vmatprep.subr.bf16.mxu1 %v112_v20 }
   0x9   :  { %253 = vmatpush3.bf16.msra.mxu0 %v36_v5  ;;  %263 = vmatpush3.bf16.msra.mxu1 %v112_v20 }
   0xa   :  { %254 = vmatprep.subr.bf16.mxu0 %v37_v11  ;;  %264 = vmatprep.subr.bf16.mxu1 %v113_v23 }
   0xd   :  { %255 = vmatpush3.bf16.msra.mxu0 %v37_v11  ;;  %265 = vmatpush3.bf16.msra.mxu1 %v113_v23 }
   0xe   :  { %256 = vmatprep.subr.bf16.mxu0 %v38_v14 }
  0x11   :  { %257 = vmatpush3.bf16.msra.mxu0 %v38_v14 }
  0x14   :  { %259 = vmatmul.mubr.msk.bf16.vlgmr.msra.gmra.mrb[0].mxu0 %vm46_vm0, %v26_v17 }
  0xe7   :  { %v260_v25 = vpop.f32.mrb[0].mxu0 }
  0xe8   :  { %v96_v26 = vadd.f32 %v260_v25, %v234_v24  ;;  %v87_v27 = vpop.f32.mrb[1].mxu0 }
  0xe9   :  { %v88_v28 = vadd.f32 %v234_v24, %v87_v27  ;;  %v261_v29 = vpop.f32.mrb[2].mxu0 }
  0xea   :  { %v99_v30 = vadd.f32 %v261_v29, %v234_v24  ;;  %v90_v31 = vpop.f32.mrb[3].mxu0  ;;  %v104_v33 = vmax.f32 %v96_v26, 0.0 }
  0xeb   :  { %v91_v32 = vadd.f32 %v234_v24, %v90_v31  ;;  %v102_v35 = vmax.f32 %v88_v28, 0.0 }
  0xec   :  { %v105_v34 = vmax.f32 %v99_v30, 0.0 }
  0xed   :  { %v103_v36 = vmax.f32 %v91_v32, 0.0 }
  0xee   :  { %v107_v37 = vpack.c.bf16 %v105_v34, %v104_v33 }
  0xef   :  { %v106_v38 = vpack.c.bf16 %v103_v36, %v102_v35 }
  0xf1   :  { %266 = vmatprep.mubr.msk.bf16.mxu1 %vm121_vm1, %v106_v38 }
  0xf2   :  { %267 = vmatmul.mubr.msk.bf16.vlgmr.msra.gmra.mrb[0].mxu1 %vm121_vm1, %v107_v37 }
 0x1c5   :  { %v268_v40 = vpop.f32.mrb[0].mxu1 }
 0x1c6   :  { %v171_v41 = vadd.f32 %v268_v40, %v237_v39  ;;  %v162_v42 = vpop.f32.mrb[1].mxu1 }
 0x1c7   :  { %v163_v43 = vadd.f32 %v237_v39, %v162_v42  ;;  %v269_v44 = vpop.f32.mrb[2].mxu1 }
 0x1c8   :  { %v174_v45 = vadd.f32 %v269_v44, %v237_v39  ;;  %v165_v46 = vpop.f32.mrb[3].mxu1  ;;  %v184_v47 = vsel %vm177_vm2, %v171_v41, -inf }
 0x1c9   :  { %v166_v48 = vadd.f32 %v237_v39, %v165_v46  ;;  %185 = vmax.xlane.f32.xlu1 %v184_v47  ;;  %v178_v49 = vsel %vm177_vm2, %v163_v43, -inf }
 0x1ca   :  { %179 = vmax.xlane.f32.xlu0 %v178_v49  ;;  %v187_v50 = vsel %vm177_vm2, %v174_v45, -inf }
 0x1cb   :  { %v181_v51 = vsel %vm177_vm2, %v166_v48, -inf }
 0x1cd   :  { %188 = vmax.xlane.f32.xlu1 %v187_v50 }
 0x1ce   :  { %182 = vmax.xlane.f32.xlu0 %v181_v51 }
 0x256   :  { %v186_v52 = vpop.xlane.xlu1 %185 }
 0x257   :  { %v192_v53 = vsub.f32 %v171_v41, %v186_v52  ;;  %v180_v54 = vpop.xlane.xlu0 %179 }
 0x258   :  { %v190_v55 = vsub.f32 %v163_v43, %v180_v54 }
 0x259   :  { %v198_v56 = vmul.f32 1.442695, %v192_v53 }
 0x25a   :  { %v194_v57 = vmul.f32 1.442695, %v190_v55  ;;  %v189_v58 = vpop.xlane.xlu1 %188 }
 0x25b   :  { %v193_v59 = vsub.f32 %v174_v45, %v189_v58  ;;  %v183_v60 = vpop.xlane.xlu0 %182 }
 0x25c   :  { %270 = vpow2.f32 %v194_v57  ;;  %v191_v61 = vsub.f32 %v166_v48, %v183_v60 }
 0x25d   :  { %272 = vpow2.f32 %v198_v56  ;;  %v200_v62 = vmul.f32 1.442695, %v193_v59 }
 0x25e   :  { %v196_v63 = vmul.f32 1.442695, %v191_v61 }
 0x260   :  { %274 = vpow2.f32 %v196_v63 }
 0x261   :  { %276 = vpow2.f32 %v200_v62 }
 0x266   :  { %v271_v0 = vpop.eup %270 }
 0x267   :  { %v202_v1 = vsel %vm177_vm2, %v271_v0, 0.0  ;;  %v273_v2 = vpop.eup %272 }
 0x268   :  { %203 = vadd.xlane.f32.xlu0 %v202_v1  ;;  %v208_v4 = vsel %vm177_vm2, %v273_v2, 0.0 }
 0x26a   :  { %v275_v3 = vpop.eup %274 }
 0x26b   :  { %v205_v5 = vsel %vm177_vm2, %v275_v3, 0.0  ;;  %v277_v6 = vpop.eup %276 }
 0x26c   :  { %209 = vadd.xlane.f32.xlu0 %v208_v4  ;;  %206 = vadd.xlane.f32.xlu1 %v205_v5  ;;  %v211_v7 = vsel %vm177_vm2, %v277_v6, 0.0 }
 0x270   :  { %212 = vadd.xlane.f32.xlu1 %v211_v7 }
 0x2f5   :  { %v204_v8 = vpop.xlane.xlu0 %203 }
 0x2f6   :  { %278 = vlog2.f32 %v204_v8 }
 0x2f9   :  { %v207_v9 = vpop.xlane.xlu1 %206  ;;  %v210_v10 = vpop.xlane.xlu0 %209 }
 0x2fa   :  { %280 = vlog2.f32 %v207_v9 }
 0x2fb   :  { %282 = vlog2.f32 %v210_v10 }
 0x2fd   :  { %v213_v11 = vpop.xlane.xlu1 %212 }
 0x2fe   :  { %284 = vlog2.f32 %v213_v11 }
 0x300   :  { %v279_v12 = vpop.eup %278 }
 0x301   :  { %v215_v13 = vmul.f32 0.6931472, %v279_v12 }
 0x303   :  { %v222_v14 = vsub.f32 %v190_v55, %v215_v13 }
 0x304   :  { %v281_v15 = vpop.eup %280 }
 0x305   :  { %v283_v16 = vpop.eup %282  ;;  %226 = vst.msk [vmem:[%s401_s5] sm:$0xff] %vm177_vm2, %v222_v14  ;;  %v217_v17 = vmul.f32 0.6931472, %v281_v15 }
 0x306   :  { %v219_v18 = vmul.f32 0.6931472, %v283_v16 }
 0x307   :  { %v223_v19 = vsub.f32 %v191_v61, %v217_v17 }
 0x308   :  { %v285_v20 = vpop.eup %284  ;;  %v224_v21 = vsub.f32 %v192_v53, %v219_v18 }
 0x309   :  { %227 = vst.msk [vmem:[%s401_s5 + $0x8] sm:$0xff] %vm177_vm2, %v223_v19  ;;  %v221_v22 = vmul.f32 0.6931472, %v285_v20 }
 0x30a   :  { %228 = vst.msk [vmem:[%s401_s5 + $0x10] sm:$0xff] %vm177_vm2, %v224_v21 }
 0x30b   :  { %v225_v23 = vsub.f32 %v193_v59, %v221_v22 }
 0x30d   :  { %229 = vst.msk [vmem:[%s401_s5 + $0x18] sm:$0xff] %vm177_vm2, %v225_v23 }

</bundles_post_ra>
